<compile_context>
chip_gen: v5e
topology: v5e:2x2
jax: 0.10.0
libtpu: 0.0.40
codegen_flags: <defaults>
</compile_context>

<pallas_src>
import jax
import jax.numpy as jnp
from jax.experimental import pallas as pl
from jax.experimental.pallas import tpu as pltpu


def _round_up(x, m):
    return (x + m - 1) // m * m


def _choose_m_tile(M, tmax):
    """Return (padded_M, tile_M): tile <= tmax, padded_M % tile == 0."""
    Mp = _round_up(M, 8)
    if Mp <= tmax:
        return Mp, Mp
    return _round_up(M, tmax), tmax


# --------------------------------------------------------------------------
# Fused matmul + bias + (residual) + (ReLU) kernel (M-tiled, weight resident)
# --------------------------------------------------------------------------
def _make_mm_kernel(relu, has_res):
    def kernel(x_ref, w_ref, b_ref, *rest):
        if has_res:
            res_ref, o_ref = rest
        else:
            (o_ref,) = rest
        y = jnp.dot(x_ref[...], w_ref[...], preferred_element_type=jnp.float32)
        y = y + b_ref[...]
        if has_res:
            y = y + res_ref[...].astype(jnp.float32)
        if relu:
            y = jnp.maximum(y, 0.0)
        o_ref[...] = y.astype(o_ref.dtype)
    return kernel


def matmul_bias_act(x, w, bias, residual=None, relu=False,
                    out_dtype=jnp.bfloat16, tmax=256):
    """act(x @ w + bias [+ residual]) with bf16 MXU inputs, f32 accumulation."""
    M, K = x.shape
    _, N = w.shape
    assert N % 128 == 0, N
    Kp = _round_up(K, 128)
    Mp, tm = _choose_m_tile(M, tmax)

    if Kp != K:
        x = jnp.pad(x, ((0, 0), (0, Kp - K)))
        w = jnp.pad(w, ((0, Kp - K), (0, 0)))
    if Mp != M:
        x = jnp.pad(x, ((0, Mp - M), (0, 0)))
    x = x.astype(jnp.bfloat16)
    w = w.astype(jnp.bfloat16)
    bias = bias.reshape(1, N).astype(jnp.float32)

    inputs = [x, w, bias]
    in_specs = [
        pl.BlockSpec((tm, Kp), lambda m: (m, 0)),   # x tile, double-buffered
        pl.BlockSpec((Kp, N), lambda m: (0, 0)),    # full weight, VMEM-resident
        pl.BlockSpec((1, N), lambda m: (0, 0)),     # folded BN bias
    ]
    if residual is not None:
        r = residual.astype(jnp.bfloat16)
        if Mp != M:
            r = jnp.pad(r, ((0, Mp - M), (0, 0)))
        inputs.append(r)
        in_specs.append(pl.BlockSpec((tm, N), lambda m: (m, 0)))

    out = pl.pallas_call(
        _make_mm_kernel(relu, residual is not None),
        out_shape=jax.ShapeDtypeStruct((Mp, N), out_dtype),
        grid=(Mp // tm,),
        in_specs=in_specs,
        out_specs=pl.BlockSpec((tm, N), lambda m: (m, 0)),
        compiler_params=pltpu.CompilerParams(
            dimension_semantics=("parallel",),        # shards M tiles over TCs
            vmem_limit_bytes=48 * 1024 * 1024),       # fits v7x 64 MiB VMEM
    )(*inputs)
    return out[:M] if Mp != M else out


# --------------------------------------------------------------------------
# Pooling kernels
# --------------------------------------------------------------------------
def _maxpool_kernel(p_ref, o_ref):
    o_ref[...] = jnp.max(p_ref[...], axis=0)


def maxpool_3x3_s2(x):
    # x: [N, H, W, C]; torch MaxPool2d(kernel=3, stride=2, padding=1)
    N, H, W, C = x.shape
    Ho = (H + 2 - 3) // 2 + 1
    Wo = (W + 2 - 3) // 2 + 1
    xp = jnp.pad(x, ((0, 0), (1, 1), (1, 1), (0, 0)),
                 constant_values=-jnp.inf)
    taps = [xp[:, ki::2, kj::2, :][:, :Ho, :Wo, :]
            for ki in range(3) for kj in range(3)]
    M = N * Ho * Wo
    patches = jnp.stack(taps, axis=0).reshape(9, M, C)
    Mp, tm = _choose_m_tile(M, 512)
    if Mp != M:
        patches = jnp.pad(patches, ((0, 0), (0, Mp - M), (0, 0)),
                          constant_values=-jnp.inf)
    out = pl.pallas_call(
        _maxpool_kernel,
        out_shape=jax.ShapeDtypeStruct((Mp, C), x.dtype),
        grid=(Mp // tm,),
        in_specs=[pl.BlockSpec((9, tm, C), lambda i: (0, i, 0))],
        out_specs=pl.BlockSpec((tm, C), lambda i: (i, 0)),
        compiler_params=pltpu.CompilerParams(
            dimension_semantics=("parallel",)),
    )(patches)
    out = out[:M] if Mp != M else out
    return out.reshape(N, Ho, Wo, C)


def _avgpool_fc_kernel(x_ref, w_ref, b_ref, o_ref):
    xm = jnp.mean(x_ref[...].astype(jnp.float32), axis=1)        # [N, 512]
    o_ref[...] = (jnp.dot(xm, w_ref[...],
                          preferred_element_type=jnp.float32) + b_ref[...])


def avgpool_fc(x, fc_w, fc_b):
    # x: [N, H, W, C] (C>=512, real features in first 512) -> logits [N, nc]
    N, H, W, C = x.shape
    nc = fc_b.shape[0]
    nc_p = _round_up(nc, 128)
    xr = x[..., :512].reshape(N, H * W, 512).astype(jnp.float32)
    wp = jnp.pad(fc_w.T, ((0, 0), (0, nc_p - nc))).astype(jnp.float32)
    bp = jnp.pad(fc_b, (0, nc_p - nc)).reshape(1, nc_p).astype(jnp.float32)
    out = pl.pallas_call(
        _avgpool_fc_kernel,
        out_shape=jax.ShapeDtypeStruct((N, nc_p), jnp.float32),
        grid=(1,),
        in_specs=[pl.BlockSpec((N, H * W, 512), lambda i: (0, 0, 0)),
                  pl.BlockSpec((512, nc_p), lambda i: (0, 0)),
                  pl.BlockSpec((1, nc_p), lambda i: (0, 0))],
        out_specs=pl.BlockSpec((N, nc_p), lambda i: (0, 0)),
    )(xr, wp, bp)
    return out[:, :nc]


# --------------------------------------------------------------------------
# Conv (im2col) + fused BN/ReLU/residual
# --------------------------------------------------------------------------
def _im2col(x, k, stride, pad):
    N, H, W, C = x.shape
    Ho = (H + 2 * pad - k) // stride + 1
    Wo = (W + 2 * pad - k) // stride + 1
    if pad:
        x = jnp.pad(x, ((0, 0), (pad, pad), (pad, pad), (0, 0)))
    if k == 1:
        cols = x[:, ::stride, ::stride, :][:, :Ho, :Wo, :]
    else:
        taps = [x[:, ki::stride, kj::stride, :][:, :Ho, :Wo, :]
                for ki in range(k) for kj in range(k)]
        cols = jnp.concatenate(taps, axis=-1)          # [N, Ho, Wo, k*k*C]
    return cols.reshape(N * Ho * Wo, k * k * C), (N, Ho, Wo)


def conv_bn_act(x, w_oihw, bn, stride, pad, relu, residual=None):
    """Conv2d(no bias) + eval-mode BN folded into weights, fused act/residual.

    Activations keep channels padded to a multiple of 128 (padded channels are
    exact zeros end-to-end)."""
    Cout, Cin, k, _ = w_oihw.shape
    Cin_p = x.shape[-1]                   # activation channels (maybe padded)
    Cout_p = _round_up(Cout, 128)

    gamma, beta, mean, var = bn
    scale = gamma * jax.lax.rsqrt(var + 1e-5)
    shift = beta - mean * scale
    scale_p = jnp.pad(scale, (0, Cout_p - Cout))
    bias = jnp.pad(shift, (0, Cout_p - Cout))

    # OIHW -> pad Cin/Cout with zeros -> (kh, kw, Cin_p, Cout_p) -> [K, Cout_p]
    w = jnp.pad(w_oihw, ((0, Cout_p - Cout), (0, Cin_p - Cin), (0, 0), (0, 0)))
    w2 = jnp.transpose(w, (2, 3, 1, 0)).reshape(k * k * Cin_p, Cout_p)
    w2 = w2 * scale_p[None, :]            # fold BN scale into the weights

    cols, (N, Ho, Wo) = _im2col(x, k, stride, pad)
    res = None if residual is None else residual.reshape(N * Ho * Wo, Cout_p)
    y = matmul_bias_act(cols, w2, bias, residual=res, relu=relu)
    return y.reshape(N, Ho, Wo, Cout_p)


def basic_block(x, p):
    s = p['stride']
    out = conv_bn_act(x, p['conv1'], p['bn1'], stride=s, pad=1, relu=True)
    if 'ds_conv' in p:
        identity = conv_bn_act(x, p['ds_conv'], p['ds_bn'],
                               stride=s, pad=0, relu=False)
    else:
        identity = x
    # conv2 -> bn2 -> (+identity) -> ReLU, all fused in the matmul epilogue
    out = conv_bn_act(out, p['conv2'], p['bn2'], stride=1, pad=1,
                      relu=True, residual=identity)
    return out


# --------------------------------------------------------------------------
# ResNet18 forward + deterministic parameter init
# --------------------------------------------------------------------------
def resnet18_forward(x_nchw, params):
    x = jnp.transpose(x_nchw, (0, 2, 3, 1)).astype(jnp.bfloat16)  # NCHW->NHWC
    x = conv_bn_act(x, params['conv1'], params['bn1'],
                    stride=2, pad=3, relu=True)
    x = maxpool_3x3_s2(x)
    for layer in params['layers']:
        for block in layer:
            x = basic_block(x, block)
    return avgpool_fc(x, params['fc_w'], params['fc_b'])           # [N, nc]


def init_params(key, num_classes=2):
    ki = iter(jax.random.split(key, 32))

    def conv_w(k, cout, cin, ksz):
        fan_in = cin * ksz * ksz
        return (jax.random.normal(k, (cout, cin, ksz, ksz), jnp.float32)
                * (2.0 / fan_in) ** 0.5)

    def bn_p(c):
        # PyTorch default: gamma=1, beta=0, running_mean=0, running_var=1
        return (jnp.ones((c,), jnp.float32), jnp.zeros((c,), jnp.float32),
                jnp.zeros((c,), jnp.float32), jnp.ones((c,), jnp.float32))

    p = {'conv1': conv_w(next(ki), 64, 3, 7), 'bn1': bn_p(64)}
    layers = []
    in_c = 64
    for out_c, strides in [(64, (1, 1)), (128, (2, 1)),
                           (256, (2, 1)), (512, (2, 1))]:
        blocks = []
        for s in strides:
            b = {'stride': s,
                 'conv1': conv_w(next(ki), out_c, in_c, 3), 'bn1': bn_p(out_c),
                 'conv2': conv_w(next(ki), out_c, out_c, 3), 'bn2': bn_p(out_c)}
            if s != 1 or in_c != out_c:
                b['ds_conv'] = conv_w(next(ki), out_c, in_c, 1)
                b['ds_bn'] = bn_p(out_c)
            blocks.append(b)
            in_c = out_c
        layers.append(blocks)
    p['layers'] = layers
    p['fc_w'] = (jax.random.normal(next(ki), (num_classes, 512), jnp.float32)
                 * (1.0 / 512) ** 0.5)
    p['fc_b'] = jnp.zeros((num_classes,), jnp.float32)
    return p


if __name__ == "__main__":
    key = jax.random.PRNGKey(0)
    pkey, xkey = jax.random.split(key)
    params = init_params(pkey, num_classes=2)
    # Small input consistent with the module: NCHW, 3 input channels.
    x = jax.random.normal(xkey, (2, 3, 32, 32), jnp.float32)
    logits = resnet18_forward(x, params)
    jax.block_until_ready(logits)
    assert logits.shape == (2, 2), logits.shape
    assert bool(jnp.all(jnp.isfinite(logits)))
    print("KERNEL_OK")
</pallas_src>

<mosaic_0001>
module attributes {stable_mosaic.version = 11 : i64} {
  func.func @kernel(%arg0: i32, %arg1: memref<256x256xbf16, #tpu.memory_space<vmem>>, %arg2: memref<256x128xbf16, #tpu.memory_space<vmem>>, %arg3: memref<1x128xf32, #tpu.memory_space<vmem>>, %arg4: memref<256x128xbf16, #tpu.memory_space<vmem>>) attributes {dimension_semantics = [#tpu.dimension_semantics<parallel>], iteration_bounds = array<i64: 2>, scalar_prefetch = 0 : i64, scratch_operands = 0 : i64, tpu.core_type = #tpu.core_type<tc>, window_params = [{transform_indices = @transform_0, window_bounds = array<i64: 256, 256>}, {pipeline_mode = #tpu.pipeline_mode<synchronous>, transform_indices = @transform_1, window_bounds = array<i64: 256, 128>}, {pipeline_mode = #tpu.pipeline_mode<synchronous>, transform_indices = @transform_2, window_bounds = array<i64: 1, 128>}, {transform_indices = @transform_3, window_bounds = array<i64: 256, 128>}]} {
    %c0 = arith.constant 0 : index
    %c0_0 = arith.constant 0 : index
    %0 = vector.load %arg1[%c0, %c0_0] : memref<256x256xbf16, #tpu.memory_space<vmem>>, vector<256x256xbf16>
    %c0_1 = arith.constant 0 : index
    %c0_2 = arith.constant 0 : index
    %1 = vector.load %arg2[%c0_1, %c0_2] : memref<256x128xbf16, #tpu.memory_space<vmem>>, vector<256x128xbf16>
    %cst = arith.constant dense<0.000000e+00> : vector<256x128xf32>
    %2 = tpu.matmul %0, %1, %cst {dimension_numbers = #tpu.dot_dimension_numbers<[1], [0], [0], [1], [0, 0, 1, 1], [], []>} : vector<256x256xbf16>, vector<256x128xbf16>, vector<256x128xf32> -> vector<256x128xf32>
    %c0_3 = arith.constant 0 : index
    %c0_4 = arith.constant 0 : index
    %3 = vector.load %arg3[%c0_3, %c0_4] : memref<1x128xf32, #tpu.memory_space<vmem>>, vector<1x128xf32>
    %4 = vector.broadcast %3 : vector<1x128xf32> to vector<256x128xf32>
    %5 = arith.addf %2, %4 : vector<256x128xf32>
    %cst_5 = arith.constant 0.000000e+00 : f32
    %6 = vector.broadcast %cst_5 : f32 to vector<256x128xf32>
    %7 = arith.maximumf %5, %6 : vector<256x128xf32>
    %8 = arith.truncf %7 : vector<256x128xf32> to vector<256x128xbf16>
    %c0_6 = arith.constant 0 : index
    %c0_7 = arith.constant 0 : index
    %9 = vector.load %arg4[%c0_6, %c0_7] : memref<256x128xbf16, #tpu.memory_space<vmem>>, vector<256x128xbf16>
    tpu.vector_store %arg4[%c0_6, %c0_7], %8 {strides = array<i32>} : memref<256x128xbf16, #tpu.memory_space<vmem>>, vector<256x128xbf16>,
    return
  }
  func.func @transform_0(%arg0: i32) -> (i32, i32) {
    %c0_i32 = arith.constant 0 : i32
    %c0_i32_0 = arith.constant 0 : i32
    return %arg0, %c0_i32 : i32, i32
  }
  func.func @transform_1(%arg0: i32) -> (i32, i32) {
    %c0_i32 = arith.constant 0 : i32
    %c0_i32_0 = arith.constant 0 : i32
    %c0_i32_1 = arith.constant 0 : i32
    return %c0_i32, %c0_i32_0 : i32, i32
  }
  func.func @transform_2(%arg0: i32) -> (i32, i32) {
    %c0_i32 = arith.constant 0 : i32
    %c0_i32_0 = arith.constant 0 : i32
    %c0_i32_1 = arith.constant 0 : i32
    return %c0_i32, %c0_i32_0 : i32, i32
  }
  func.func @transform_3(%arg0: i32) -> (i32, i32) {
    %c0_i32 = arith.constant 0 : i32
    %c0_i32_0 = arith.constant 0 : i32
    return %arg0, %c0_i32 : i32, i32
  }
}

</mosaic_0001>

<bundles_post_ra>
// kernel: tpu_custom_call.1
= control target key start
LH: loop header
LB: loop body
LE: loop exit
PB: predicated region body
PF: predicated region fallthrough
CT: control target
= control target key end

     0   :  { %8 = vsyncpa [#allocation3], 0  ;;  %s1765_s0 = inlined_call_operand.hbm [shape: bf16[512,256], index: 0, kind: input, shape index: {}]   ;;  %s1766_s1 = inlined_call_operand.hbm [shape: bf16[256,128], index: 1, kind: input, shape index: {}]   ;;  %s1767_s2 = inlined_call_operand.vmem [shape: f32[1,128], index: 2, kind: input, shape index: {}]   ;;  %s1768_s3 = inlined_call_operand.hbm [shape: bf16[512,128], index: 3, kind: output, shape index: {}]  }
   0x1   :  { %10 = vsyncpa [#allocation3 + $0x1], 0 }
   0x2   :  { %11 = vsyncpa [#allocation6], 0 }
   0x3   :  { %12 = vsyncpa [#allocation4], 0 }
   0x4   :  { %14 = vsyncpa [#allocation4 + $0x1], 0  ;;  %s1502_s12 = smov 0   ;;  %s1504_s13 = smov 0  }
   0x5   :  { %s1506_s14 = smov 0   ;;  %s1508_s15 = smov 0  }
   0x6 LB: > { %s1523_s16 = sadd.s32 4294967295, %s1473_s15   ;;  %s908_s17 = sadd.s32 4294967294, %s1473_s15   ;;  %s1473_s15 = sphi %s1508_s15, %s1778_s15   ;;  %s1469_s14 = sphi %s1506_s14, %s1777_s14   ;;  %s1465_s13 = sphi %s1504_s13, %s1776_s13   ;;  %s1461_s12 = sphi %s1502_s12, %s1775_s12  }
   0x7   : > { %p40_p0 = scmp.ne.s32.totalorder %s1465_s13, %s1461_s12  ;;  %p41_p1 = scmp.eq.s32.totalorder %s1523_s16, 0 }
   0x8   : > { %p106_p2 = scmp.eq.s32.totalorder %s1523_s16, 1  ;;  %p112_p3 = scmp.eq.s32.totalorder %s908_s17, 1 }
   0x9   : > { %p1532_p4 = por %p41_p1, %p40_p0  ;;  %p909_p5 = scmp.ge.s32.totalorder %s1473_s15, 1 }
   0xa   : > { %p1537_p6 = por %p112_p3, %p40_p0  ;;  %p119_p7 = scmp.lt.s32.totalorder %s1473_s15, 3 }
   0xb   : > { %s130_s22 = sshll.u32 %s1766_s1, 4  ;;  %s1475_s24 = smov [#allocation5]   ;;  %s131_s22 = int_to_ptr.hbm [resolvable:$true] %s130_s22 }
   0xc   : > { %p1545_p8 = pnand %p909_p5, %p119_p7  ;;  %s132_s25 = sshll.u32 %s1475_s24, 4  ;;  %s133_s25 = int_to_ptr.vmem [resolvable:$true] %s132_s25 }
   0xd   : > { %s1555_s26 = sadd.s32 1, %s1473_s15   ;;  %s1476_s27 = smov 64  }
   0xe   : > { %p1287_p9 = pneg %p1545_p8  ;;  %s1477_s28 = smov 4  }
   0xf   : > { %s24_s29 = ssub.s32 %s1473_s15, %s1555_s26  ;;  %s27_s30 = sadd.s32 1, %s1469_s14 }
  0x10   : > { %p1288_p10 = pnand %p1287_p9, %p41_p1  ;;  %p25_p12 = scmp.eq.s32.totalorder %s24_s29, 0 }
  0x11   : > { %p34_p13 = scmp.ne.s32.totalorder %s1469_s14, %s1465_s13  ;;  %p35_p0 = scmp.eq.s32.totalorder %s1473_s15, 0 }
  0x12   : > { %1290 = dma.hbm_to_vmem [thread:$0]  (!%p1288_p10), %s131_s22, 2048, %s133_s25, [#allocation6], %s1476_s27, %s1476_s27, %s1477_s28  }
  0x13   : > { %p1300_p3 = scmp.lt.s32.totalorder %s1473_s15, 2  ;;  %p36_p5 = por %p35_p0, %p34_p13 }
  0x14   : > { %s1565_s4 = scalar_select %p25_p12, %s1469_s14, %s27_s30  }
  0x15   : > { %p1569_p7 = por %p106_p2, %p34_p13  ;;  %s149_s6 = sand.u32 1, %s1469_s14  }
  0x16   : > { %s1118_s7 = sshll.u32 %s1473_s15, 8  ;;  %s912_s8 = sshll.u32 %s149_s6, 8 }
  0x17   : > { %s159_s11 = scalar_lea.hbm %s1765_s0, %s1118_s7  ;;  %s153_s20 = scalar_lea.vmem [#allocation2], %s912_s8 }
  0x18   : > { %s160_s17 = sshll.u32 %s159_s11, 4  ;;  %s162_s21 = sshll.u32 %s153_s20, 4  ;;  %s161_s17 = int_to_ptr.hbm [resolvable:$true] %s160_s17  ;;  %s163_s21 = int_to_ptr.vmem [resolvable:$true] %s162_s21 }
  0x19   : > { %p1580_p9 = pnand %p1300_p3, %p36_p5  ;;  %s150_s24 = scalar_lea.sflag [#allocation3], %s149_s6 }
  0x1a   : > { %s1373_s25 = sshra.s32 %s161_s17, 4  ;;  %s1380_s30 = scalar_lea.hbm %s1765_s0, 512  ;;  %s1374_s25 = int_to_ptr.hbm [resolvable:$true] %s1373_s25 }
  0x1b   : > { %s1375_s27 = scalar_lea.hbm %s1374_s25, 256  ;;  %p1377_p10 = pneg %p1580_p9 }
  0x1c   : > { %p1376_p2 = scmp.ne.s32.totalorder %s1374_s25, %s1375_s27  ;;  %p1381_p0 = scmp.lt.s32.totalorder %s1374_s25, %s1765_s0 }
  0x1d   : > { %p1382_p3 = scmp.lt.s32.totalorder %s1380_s30, %s1375_s27 }
  0x1e   : > { %p1378_p12 = pnand %p1377_p10, %p1376_p2 }
  0x1f   : > { %p1383_p5 = por %p1382_p3, %p1381_p0 }
  0x20   : > { %p1379_p13 = pneg %p1378_p12 }
  0x22   : > { %p1384_p11 = pnand %p1383_p5, %p1379_p13 }
  0x24   : > { %1387 = shalt.err (!%p1384_p11)
}
  0x25   : > { %s1478_s6 = smov 128   ;;  %s1479_s9 = smov 8  }
  0x26   : > { %1294 = dma.hbm_to_vmem [thread:$0]  (!%p1580_p9), %s161_s17, 4096, %s163_s21, %s150_s24, %s1478_s6, %s1478_s6, %s1479_s9  }
  0x27   : > { %174 = sbr.rel (%p1545_p8) target bundleno = 343 (0x157), region = 32  ;;  %s1597_s10 = sand.u32 (!%p1545_p8), 1, %s1465_s13  }
  0x28   : > { %s917_s11 = sshll.u32 (!%p1545_p8), %s1597_s10, 8  ;;  %s177_s20 = scalar_lea.sflag (!%p1545_p8), [#allocation3], %s1597_s10 }
  0x29   : > { %s1601_s25 = scalar_lea.vmem (!%p1545_p8), [#allocation2], %s917_s11 }
  0x2c   : > { %1448 = dma.done.wait (%p1532_p4), %s177_s20, 4096  }
  0x2d   : > { %1450 = vsyncadd (%p1532_p4), %s177_s20, 4294963200 }
  0x2e   : > { %1452 = dma.done.wait (%p41_p1), [#allocation6], 2048  }
  0x2f   : > { %1454 = vsyncadd (%p41_p1), [#allocation6], 4294965248  ;;  %v1158_v0 = vld [vmem:[#allocation5 + $0x38] sm:$0xff]  ;;  %v1157_v2 = vld [vmem:[#allocation5 + $0x30] sm:$0xff]  ;;  %s919_s17 = sshll.u32 %s1597_s10, 7  ;;  %s1167_s22 = sshll.u32 %s1523_s16, 7 }
  0x30   : > { %v1166_v1 = vld [vmem:[#allocation5 + $0x78] sm:$0xff]  ;;  %535 = vmatpush.bf16.msra.mxu0 %v1158_v0  ;;  %1263 = vmatpush.bf16.msra.mxu2 %v1158_v0  ;;  %v1165_v3 = vld [vmem:[#allocation5 + $0x70] sm:$0xff]  ;;  %v1156_v4 = vld [vmem:[#allocation5 + $0x28] sm:$0xff]  ;;  %s1685_s21 = scalar_lea.vmem [#allocation7], %s919_s17  ;;  %s821_s28 = scalar_lea.hbm %s1768_s3, %s1167_s22 }
  0x31   : > { %624 = vmatpush.bf16.msra.mxu1 %v1166_v1  ;;  %1271 = vmatpush.bf16.msra.mxu3 %v1166_v1  ;;  %v1164_v5 = vld [vmem:[#allocation5 + $0x68] sm:$0xff]  ;;  %v1155_v6 = vld [vmem:[#allocation5 + $0x20] sm:$0xff]  ;;  %v1154_v8 = vld [vmem:[#allocation5 + $0x18] sm:$0xff]  ;;  %s822_s29 = sshll.u32 %s1685_s21, 4  ;;  %s824_s30 = sshll.u32 %s821_s28, 4  ;;  %s823_s29 = int_to_ptr.vmem [resolvable:$true] %s822_s29  ;;  %s825_s30 = int_to_ptr.hbm [resolvable:$true] %s824_s30 }
  0x32   : > { %v1163_v7 = vld [vmem:[#allocation5 + $0x60] sm:$0xff]  ;;  %v1162_v9 = vld [vmem:[#allocation5 + $0x58] sm:$0xff]  ;;  %v1153_v10 = vld [vmem:[#allocation5 + $0x10] sm:$0xff]  ;;  %s810_s16 = scalar_lea.sflag [#allocation4], %s1597_s10  ;;  %s1417_s7 = sshra.s32 %s825_s30, 4  ;;  %s1418_s7 = int_to_ptr.hbm [resolvable:$true] %s1417_s7 }
  0x33   : > { %v1161_v11 = vld [vmem:[#allocation5 + $0x50] sm:$0xff]  ;;  %v1152_v12 = vld [vmem:[#allocation5 + $0x8] sm:$0xff]  ;;  %v1151_v14 = vld [vmem:[#allocation5] sm:$0xff]  ;;  %s1419_s8 = scalar_lea.hbm %s1418_s7, 128  ;;  %s1423_s11 = scalar_lea.hbm %s1768_s3, 256 }
  0x34   : > { %536 = vmatpush.bf16.msra.mxu0 %v1157_v2  ;;  %1264 = vmatpush.bf16.msra.mxu2 %v1157_v2  ;;  %v1160_v13 = vld [vmem:[#allocation5 + $0x48] sm:$0xff]  ;;  %v1159_v15 = vld [vmem:[#allocation5 + $0x40] sm:$0xff]  ;;  %v930_v28 = vld [vmem:[%s1601_s25 + $0x10] sm:$0xf]  ;;  %p1420_p1 = scmp.ne.s32.totalorder %s1418_s7, %s1419_s8  ;;  %p1424_p11 = scmp.lt.s32.totalorder %s1418_s7, %s1768_s3 }
  0x35   : > { %625 = vmatpush.bf16.msra.mxu1 %v1165_v3  ;;  %1272 = vmatpush.bf16.msra.mxu3 %v1165_v3  ;;  %v922_v16 = vld [vmem:[%s1601_s25] sm:$0xf]  ;;  %v1120_v17 = vld [vmem:[%s1601_s25 + $0x4] sm:$0xf0]  ;;  %v1119_v20 = vld [vmem:[%s1601_s25 + $0x4] sm:$0xf]  ;;  %p1425_p9 = scmp.lt.s32.totalorder %s1423_s11, %s1419_s8 }
  0x36   : > { %v986_v18 = vld [vmem:[%s1601_s25 + $0x80] sm:$0xf]  ;;  %v1136_v19 = vld [vmem:[%s1601_s25 + $0x84] sm:$0xf0]  ;;  %v924_v21 = vld [vmem:[%s1601_s25 + $0x8] sm:$0xf0]  ;;  %v923_v24 = vor.u32 %v1120_v17, %v922_v16  ;;  %p1421_p4 = pnand %p1420_p1, %p1569_p7 }
  0x37   : > { %v1135_v22 = vld [vmem:[%s1601_s25 + $0x84] sm:$0xf]  ;;  %v988_v23 = vld [vmem:[%s1601_s25 + $0x88] sm:$0xf0]  ;;  %v987_v25 = vor.u32 %v1136_v19, %v986_v18  ;;  %v927_v26 = vor.u32 %v1119_v20, %v924_v21  ;;  %v1122_v29 = vld [vmem:[%s1601_s25 + $0x14] sm:$0xf0]  ;;  %p1426_p2 = por %p1425_p9, %p1424_p11 }
  0x38   : > { %537 = vmatpush.bf16.msra.mxu0 %v1156_v4  ;;  %1265 = vmatpush.bf16.msra.mxu2 %v1156_v4  ;;  %v991_v27 = vor.u32 %v1135_v22, %v988_v23  ;;  %v994_v30 = vld [vmem:[%s1601_s25 + $0x90] sm:$0xf]  ;;  %v1138_v31 = vld [vmem:[%s1601_s25 + $0x94] sm:$0xf0]  ;;  %v1121_v32 = vld [vmem:[%s1601_s25 + $0x14] sm:$0xf]  ;;  %v931_v36 = vor.u32 %v1122_v29, %v930_v28  ;;  %p1422_p8 = pneg %p1421_p4 }
  0x39   : > { %626 = vmatpush.bf16.msra.mxu1 %v1164_v5  ;;  %1273 = vmatpush.bf16.msra.mxu3 %v1164_v5  ;;  %v932_v33 = vld [vmem:[%s1601_s25 + $0x18] sm:$0xf0]  ;;  %v1137_v34 = vld [vmem:[%s1601_s25 + $0x94] sm:$0xf]  ;;  %v995_v37 = vor.u32 %v1138_v31, %v994_v30  ;;  %v938_v40 = vld [vmem:[%s1601_s25 + $0x20] sm:$0xf] }
  0x3a   : > { %v996_v35 = vld [vmem:[%s1601_s25 + $0x98] sm:$0xf0]  ;;  %v935_v38 = vor.u32 %v1121_v32, %v932_v33  ;;  %v1124_v41 = vld [vmem:[%s1601_s25 + $0x24] sm:$0xf0]  ;;  %v1002_v42 = vld [vmem:[%s1601_s25 + $0xa0] sm:$0xf]  ;;  %p1427_p10 = pnand %p1426_p2, %p1422_p8 }
  0x3b   : > { %v999_v39 = vor.u32 %v1137_v34, %v996_v35  ;;  %v1140_v43 = vld [vmem:[%s1601_s25 + $0xa4] sm:$0xf0]  ;;  %v1123_v44 = vld [vmem:[%s1601_s25 + $0x24] sm:$0xf]  ;;  %v940_v45 = vld [vmem:[%s1601_s25 + $0x28] sm:$0xf0]  ;;  %v939_v48 = vor.u32 %v1124_v41, %v938_v40 }
  0x3c   : > { %538 = vmatpush.bf16.msra.mxu0 %v1155_v6  ;;  %1266 = vmatpush.bf16.msra.mxu2 %v1155_v6  ;;  %v1139_v46 = vld [vmem:[%s1601_s25 + $0xa4] sm:$0xf]  ;;  %v1004_v47 = vld [vmem:[%s1601_s25 + $0xa8] sm:$0xf0]  ;;  %v1003_v49 = vor.u32 %v1140_v43, %v1002_v42  ;;  %v943_v50 = vor.u32 %v1123_v44, %v940_v45  ;;  %v946_v52 = vld [vmem:[%s1601_s25 + $0x30] sm:$0xf] }
  0x3d   : > { %627 = vmatpush.bf16.msra.mxu1 %v1163_v7  ;;  %1274 = vmatpush.bf16.msra.mxu3 %v1163_v7  ;;  %v1007_v51 = vor.u32 %v1139_v46, %v1004_v47  ;;  %v1126_v53 = vld [vmem:[%s1601_s25 + $0x34] sm:$0xf0]  ;;  %v1010_v54 = vld [vmem:[%s1601_s25 + $0xb0] sm:$0xf]  ;;  %v1125_v56 = vld [vmem:[%s1601_s25 + $0x34] sm:$0xf] }
  0x3e   : > { %v1142_v55 = vld [vmem:[%s1601_s25 + $0xb4] sm:$0xf0]  ;;  %v948_v57 = vld [vmem:[%s1601_s25 + $0x38] sm:$0xf0]  ;;  %v1141_v58 = vld [vmem:[%s1601_s25 + $0xb4] sm:$0xf]  ;;  %v947_v60 = vor.u32 %v1126_v53, %v946_v52 }
  0x3f   : > { %v1012_v59 = vld [vmem:[%s1601_s25 + $0xb8] sm:$0xf0]  ;;  %v1011_v61 = vor.u32 %v1142_v55, %v1010_v54  ;;  %v951_v62 = vor.u32 %v1125_v56, %v948_v57  ;;  %v954_v0 = vld [vmem:[%s1601_s25 + $0x40] sm:$0xf]  ;;  %v1128_v1 = vld [vmem:[%s1601_s25 + $0x44] sm:$0xf0] }
  0x40   : > { %539 = vmatpush.bf16.msra.mxu0 %v1154_v8  ;;  %1267 = vmatpush.bf16.msra.mxu2 %v1154_v8  ;;  %v1015_v63 = vor.u32 %v1141_v58, %v1012_v59  ;;  %v1018_v2 = vld [vmem:[%s1601_s25 + $0xc0] sm:$0xf]  ;;  %v1144_v3 = vld [vmem:[%s1601_s25 + $0xc4] sm:$0xf0]  ;;  %v1127_v4 = vld [vmem:[%s1601_s25 + $0x44] sm:$0xf]  ;;  %v955_v8 = vor.u32 %v1128_v1, %v954_v0 }
  0x41   : > { %628 = vmatpush.bf16.msra.mxu1 %v1162_v9  ;;  %1275 = vmatpush.bf16.msra.mxu3 %v1162_v9  ;;  %v956_v5 = vld [vmem:[%s1601_s25 + $0x48] sm:$0xf0]  ;;  %v1143_v6 = vld [vmem:[%s1601_s25 + $0xc4] sm:$0xf]  ;;  %v1019_v9 = vor.u32 %v1144_v3, %v1018_v2  ;;  %v1129_v16 = vld [vmem:[%s1601_s25 + $0x54] sm:$0xf] }
  0x42   : > { %v1020_v7 = vld [vmem:[%s1601_s25 + $0xc8] sm:$0xf0]  ;;  %v964_v17 = vld [vmem:[%s1601_s25 + $0x58] sm:$0xf0]  ;;  %v1145_v18 = vld [vmem:[%s1601_s25 + $0xd4] sm:$0xf] }
  0x43   : > { %v1028_v19 = vld [vmem:[%s1601_s25 + $0xd8] sm:$0xf0]  ;;  %v967_v22 = vor.u32 %v1129_v16, %v964_v17  ;;  %v1131_v28 = vld [vmem:[%s1601_s25 + $0x64] sm:$0xf]  ;;  %v972_v29 = vld [vmem:[%s1601_s25 + $0x68] sm:$0xf0] }
  0x44   : > { %540 = vmatpush.bf16.msra.mxu0 %v1153_v10  ;;  %1268 = vmatpush.bf16.msra.mxu2 %v1153_v10  ;;  %v959_v10 = vor.u32 %v1127_v4, %v956_v5  ;;  %v1031_v23 = vor.u32 %v1145_v18, %v1028_v19  ;;  %v1147_v30 = vld [vmem:[%s1601_s25 + $0xe4] sm:$0xf]  ;;  %v1036_v31 = vld [vmem:[%s1601_s25 + $0xe8] sm:$0xf0]  ;;  %v975_v34 = vor.u32 %v1131_v28, %v972_v29  ;;  %v1133_v40 = vld [vmem:[%s1601_s25 + $0x74] sm:$0xf] }
  0x45   : > { %629 = vmatpush.bf16.msra.mxu1 %v1161_v11  ;;  %1276 = vmatpush.bf16.msra.mxu3 %v1161_v11  ;;  %v1023_v11 = vor.u32 %v1143_v6, %v1020_v7  ;;  %v1039_v35 = vor.u32 %v1147_v30, %v1036_v31  ;;  %v980_v41 = vld [vmem:[%s1601_s25 + $0x78] sm:$0xf0]  ;;  %v1149_v42 = vld [vmem:[%s1601_s25 + $0xf4] sm:$0xf] }
  0x46   : > { %v1044_v43 = vld [vmem:[%s1601_s25 + $0xf8] sm:$0xf0]  ;;  %v983_v46 = vor.u32 %v1133_v40, %v980_v41 }
  0x47   : > { %v1047_v47 = vor.u32 %v1149_v42, %v1044_v43 }
  0x48   : > { %541 = vmatpush.bf16.msra.mxu0 %v1152_v12  ;;  %1269 = vmatpush.bf16.msra.mxu2 %v1152_v12  ;;  %v962_v12 = vld [vmem:[%s1601_s25 + $0x50] sm:$0xf] }
  0x49   : > { %630 = vmatpush.bf16.msra.mxu1 %v1160_v13  ;;  %1277 = vmatpush.bf16.msra.mxu3 %v1160_v13  ;;  %v1130_v13 = vld [vmem:[%s1601_s25 + $0x54] sm:$0xf0] }
  0x4a   : > { %v963_v20 = vor.u32 %v1130_v13, %v962_v12 }
  0x4c   : > { %542 = vmatpush.bf16.msra.mxu0 %v1151_v14  ;;  %1270 = vmatpush.bf16.msra.mxu2 %v1151_v14  ;;  %v1026_v14 = vld [vmem:[%s1601_s25 + $0xd0] sm:$0xf] }
  0x4d   : > { %631 = vmatpush.bf16.msra.mxu1 %v1159_v15  ;;  %1278 = vmatpush.bf16.msra.mxu3 %v1159_v15  ;;  %v1146_v15 = vld [vmem:[%s1601_s25 + $0xd4] sm:$0xf0] }
  0x4e   : > { %v1027_v21 = vor.u32 %v1146_v15, %v1026_v14 }
  0x4f   : > { %543 = vmatmul.bf16.vlgmr.msra.gmra.mxu0 %v923_v24  ;;  %583 = vmatmul.bf16.vlgmr.msra.gmra.mxu2 %v987_v25  ;;  %v970_v24 = vld [vmem:[%s1601_s25 + $0x60] sm:$0xf]  ;;  %v1132_v25 = vld [vmem:[%s1601_s25 + $0x64] sm:$0xf0] }
  0x50   : > { %632 = vmatmul.bf16.vlgmr.msra.gmra.mxu1 %v927_v26  ;;  %672 = vmatmul.bf16.vlgmr.msra.gmra.mxu3 %v991_v27  ;;  %v1034_v26 = vld [vmem:[%s1601_s25 + $0xe0] sm:$0xf]  ;;  %v1148_v27 = vld [vmem:[%s1601_s25 + $0xe4] sm:$0xf0]  ;;  %v971_v32 = vor.u32 %v1132_v25, %v970_v24 }
  0x51   : > { %v1035_v33 = vor.u32 %v1148_v27, %v1034_v26 }
  0x5f   : > { %548 = vmatmul.bf16.gmra.mxu0 %v931_v36  ;;  %588 = vmatmul.bf16.gmra.mxu2 %v995_v37  ;;  %v978_v36 = vld [vmem:[%s1601_s25 + $0x70] sm:$0xf]  ;;  %v1134_v37 = vld [vmem:[%s1601_s25 + $0x74] sm:$0xf0] }
  0x60   : > { %637 = vmatmul.bf16.gmra.mxu1 %v935_v38  ;;  %677 = vmatmul.bf16.gmra.mxu3 %v999_v39  ;;  %v1042_v38 = vld [vmem:[%s1601_s25 + $0xf0] sm:$0xf]  ;;  %v1150_v39 = vld [vmem:[%s1601_s25 + $0xf4] sm:$0xf0]  ;;  %v979_v44 = vor.u32 %v1134_v37, %v978_v36 }
  0x61   : > { %v1043_v45 = vor.u32 %v1150_v39, %v1042_v38 }
  0x6f   : > { %553 = vmatmul.bf16.gmra.mxu0 %v939_v48  ;;  %593 = vmatmul.bf16.gmra.mxu2 %v1003_v49  ;;  %v1678_v49 = vld [vmem:[%s1767_s2] ss:$0 sm:$0xff] }
  0x70   : > { %642 = vmatmul.bf16.gmra.mxu1 %v943_v50  ;;  %682 = vmatmul.bf16.gmra.mxu3 %v1007_v51 }
  0x7f   : > { %558 = vmatmul.bf16.gmra.mxu0 %v947_v60  ;;  %598 = vmatmul.bf16.gmra.mxu2 %v1011_v61 }
  0x80   : > { %647 = vmatmul.bf16.gmra.mxu1 %v951_v62  ;;  %687 = vmatmul.bf16.gmra.mxu3 %v1015_v63 }
  0x8f   : > { %563 = vmatmul.bf16.gmra.mxu0 %v955_v8  ;;  %603 = vmatmul.bf16.gmra.mxu2 %v1019_v9 }
  0x90   : > { %652 = vmatmul.bf16.gmra.mxu1 %v959_v10  ;;  %692 = vmatmul.bf16.gmra.mxu3 %v1023_v11 }
  0x9f   : > { %568 = vmatmul.bf16.gmra.mxu0 %v963_v20  ;;  %608 = vmatmul.bf16.gmra.mxu2 %v1027_v21 }
  0xa0   : > { %657 = vmatmul.bf16.gmra.mxu1 %v967_v22  ;;  %697 = vmatmul.bf16.gmra.mxu3 %v1031_v23 }
  0xaf   : > { %573 = vmatmul.bf16.gmra.mxu0 %v971_v32  ;;  %613 = vmatmul.bf16.gmra.mxu2 %v1035_v33 }
  0xb0   : > { %662 = vmatmul.bf16.gmra.mxu1 %v975_v34  ;;  %702 = vmatmul.bf16.gmra.mxu3 %v1039_v35 }
  0xbf   : > { %578 = vmatmul.bf16.gmra.mxu0 %v979_v44  ;;  %618 = vmatmul.bf16.gmra.mxu2 %v1043_v45 }
  0xc0   : > { %667 = vmatmul.bf16.gmra.mxu1 %v983_v46  ;;  %707 = vmatmul.bf16.gmra.mxu3 %v1047_v47 }
  0xcc   : > { %v544_v48 = vpop.f32.mrf.mxu0 }
  0xcd   : > { %v633_v50 = vpop.f32.mrf.mxu1  ;;  %v545_v51 = vadd.f32 %v1678_v49, %v544_v48 }
  0xcf   : > { %v634_v55 = vadd.f32 %v633_v50, %v545_v51 }
  0xd1   : > { %v713_v60 = vmax.f32 %v634_v55, 0.0 }
  0xd2   : > { %v584_v52 = vpop.f32.mrf.mxu2 }
  0xd3   : > { %v673_v53 = vpop.f32.mrf.mxu3  ;;  %v585_v58 = vadd.f32 %v1678_v49, %v584_v52 }
  0xd4   : > { %v546_v54 = vpop.f32.mrf.mxu0 }
  0xd5   : > { %v547_v56 = vadd.f32 %v1678_v49, %v546_v54  ;;  %v635_v57 = vpop.f32.mrf.mxu1  ;;  %v674_v63 = vadd.f32 %v673_v53, %v585_v58 }
  0xd7   : > { %v636_v59 = vadd.f32 %v635_v57, %v547_v56  ;;  %v729_v6 = vmax.f32 %v674_v63, 0.0 }
  0xd9   : > { %v714_v61 = vmax.f32 %v636_v59, 0.0 }
  0xda   : > { %v586_v62 = vpop.f32.mrf.mxu2 }
  0xdb   : > { %v1171_v0 = vpack.c.bf16 %v714_v61, %v713_v60  ;;  %v587_v1 = vadd.f32 %v1678_v49, %v586_v62  ;;  %v675_v2 = vpop.f32.mrf.mxu3 }
  0xdc   : > { %v549_v3 = vpop.f32.mrf.mxu0 }
  0xdd   : > { %1172 = vst [vmem:[%s1685_s21] sm:$0xff] %v1171_v0   ;;  %v676_v4 = vadd.f32 %v675_v2, %v587_v1  ;;  %v638_v5 = vpop.f32.mrf.mxu1  ;;  %v550_v9 = vadd.f32 %v1678_v49, %v549_v3 }
  0xdf   : > { %v730_v7 = vmax.f32 %v676_v4, 0.0  ;;  %v639_v13 = vadd.f32 %v638_v5, %v550_v9 }
  0xe1   : > { %v1211_v8 = vpack.c.bf16 %v730_v7, %v729_v6  ;;  %v715_v18 = vmax.f32 %v639_v13, 0.0 }
  0xe2   : > { %v589_v10 = vpop.f32.mrf.mxu2 }
  0xe3   : > { %1255 = vst [vmem:[%s1685_s21 + $0x40] sm:$0xff] %v1211_v8   ;;  %v678_v11 = vpop.f32.mrf.mxu3  ;;  %v590_v16 = vadd.f32 %v1678_v49, %v589_v10 }
  0xe4   : > { %v551_v12 = vpop.f32.mrf.mxu0 }
  0xe5   : > { %v552_v14 = vadd.f32 %v1678_v49, %v551_v12  ;;  %v640_v15 = vpop.f32.mrf.mxu1  ;;  %v679_v21 = vadd.f32 %v678_v11, %v590_v16 }
  0xe7   : > { %v641_v17 = vadd.f32 %v640_v15, %v552_v14  ;;  %v731_v28 = vmax.f32 %v679_v21, 0.0 }
  0xe9   : > { %v716_v19 = vmax.f32 %v641_v17, 0.0 }
  0xea   : > { %v591_v20 = vpop.f32.mrf.mxu2 }
  0xeb   : > { %v1176_v22 = vpack.c.bf16 %v716_v19, %v715_v18  ;;  %v592_v23 = vadd.f32 %v1678_v49, %v591_v20  ;;  %v680_v24 = vpop.f32.mrf.mxu3 }
  0xec   : > { %v554_v25 = vpop.f32.mrf.mxu0 }
  0xed   : > { %1248 = vst [vmem:[%s1685_s21 + $0x8] sm:$0xff] %v1176_v22   ;;  %v681_v26 = vadd.f32 %v680_v24, %v592_v23  ;;  %v643_v27 = vpop.f32.mrf.mxu1  ;;  %v555_v31 = vadd.f32 %v1678_v49, %v554_v25 }
  0xef   : > { %v732_v29 = vmax.f32 %v681_v26, 0.0  ;;  %v644_v35 = vadd.f32 %v643_v27, %v555_v31 }
  0xf1   : > { %v1216_v30 = vpack.c.bf16 %v732_v29, %v731_v28  ;;  %v717_v40 = vmax.f32 %v644_v35, 0.0 }
  0xf2   : > { %v594_v32 = vpop.f32.mrf.mxu2 }
  0xf3   : > { %1256 = vst [vmem:[%s1685_s21 + $0x48] sm:$0xff] %v1216_v30   ;;  %v683_v33 = vpop.f32.mrf.mxu3  ;;  %v595_v38 = vadd.f32 %v1678_v49, %v594_v32 }
  0xf4   : > { %v556_v34 = vpop.f32.mrf.mxu0 }
  0xf5   : > { %v557_v36 = vadd.f32 %v1678_v49, %v556_v34  ;;  %v645_v37 = vpop.f32.mrf.mxu1  ;;  %v684_v43 = vadd.f32 %v683_v33, %v595_v38 }
  0xf7   : > { %v646_v39 = vadd.f32 %v645_v37, %v557_v36  ;;  %v733_v51 = vmax.f32 %v684_v43, 0.0 }
  0xf9   : > { %v718_v41 = vmax.f32 %v646_v39, 0.0 }
  0xfa   : > { %v596_v42 = vpop.f32.mrf.mxu2 }
  0xfb   : > { %v1181_v44 = vpack.c.bf16 %v718_v41, %v717_v40  ;;  %v597_v45 = vadd.f32 %v1678_v49, %v596_v42  ;;  %v685_v46 = vpop.f32.mrf.mxu3 }
  0xfc   : > { %v559_v47 = vpop.f32.mrf.mxu0 }
  0xfd   : > { %1249 = vst [vmem:[%s1685_s21 + $0x10] sm:$0xff] %v1181_v44   ;;  %v686_v48 = vadd.f32 %v685_v46, %v597_v45  ;;  %v648_v50 = vpop.f32.mrf.mxu1  ;;  %v560_v54 = vadd.f32 %v1678_v49, %v559_v47 }
  0xff   : > { %v734_v52 = vmax.f32 %v686_v48, 0.0  ;;  %v649_v58 = vadd.f32 %v648_v50, %v560_v54 }
 0x101   : > { %v1221_v53 = vpack.c.bf16 %v734_v52, %v733_v51  ;;  %v719_v63 = vmax.f32 %v649_v58, 0.0 }
 0x102   : > { %v599_v55 = vpop.f32.mrf.mxu2 }
 0x103   : > { %1257 = vst [vmem:[%s1685_s21 + $0x50] sm:$0xff] %v1221_v53   ;;  %v688_v56 = vpop.f32.mrf.mxu3  ;;  %v600_v61 = vadd.f32 %v1678_v49, %v599_v55 }
 0x104   : > { %v561_v57 = vpop.f32.mrf.mxu0 }
 0x105   : > { %v562_v59 = vadd.f32 %v1678_v49, %v561_v57  ;;  %v650_v60 = vpop.f32.mrf.mxu1  ;;  %v689_v2 = vadd.f32 %v688_v56, %v600_v61 }
 0x107   : > { %v651_v62 = vadd.f32 %v650_v60, %v562_v59  ;;  %v735_v9 = vmax.f32 %v689_v2, 0.0 }
 0x109   : > { %v720_v0 = vmax.f32 %v651_v62, 0.0 }
 0x10a   : > { %v601_v1 = vpop.f32.mrf.mxu2 }
 0x10b   : > { %v1186_v3 = vpack.c.bf16 %v720_v0, %v719_v63  ;;  %v602_v4 = vadd.f32 %v1678_v49, %v601_v1  ;;  %v690_v5 = vpop.f32.mrf.mxu3 }
 0x10c   : > { %v564_v6 = vpop.f32.mrf.mxu0 }
 0x10d   : > { %1250 = vst [vmem:[%s1685_s21 + $0x18] sm:$0xff] %v1186_v3   ;;  %v691_v7 = vadd.f32 %v690_v5, %v602_v4  ;;  %v653_v8 = vpop.f32.mrf.mxu1  ;;  %v565_v12 = vadd.f32 %v1678_v49, %v564_v6 }
 0x10f   : > { %v736_v10 = vmax.f32 %v691_v7, 0.0  ;;  %v654_v16 = vadd.f32 %v653_v8, %v565_v12 }
 0x111   : > { %v1226_v11 = vpack.c.bf16 %v736_v10, %v735_v9  ;;  %v721_v21 = vmax.f32 %v654_v16, 0.0 }
 0x112   : > { %v604_v13 = vpop.f32.mrf.mxu2 }
 0x113   : > { %1258 = vst [vmem:[%s1685_s21 + $0x58] sm:$0xff] %v1226_v11   ;;  %v693_v14 = vpop.f32.mrf.mxu3  ;;  %v605_v19 = vadd.f32 %v1678_v49, %v604_v13 }
 0x114   : > { %v566_v15 = vpop.f32.mrf.mxu0 }
 0x115   : > { %v567_v17 = vadd.f32 %v1678_v49, %v566_v15  ;;  %v655_v18 = vpop.f32.mrf.mxu1  ;;  %v694_v24 = vadd.f32 %v693_v14, %v605_v19 }
 0x117   : > { %v656_v20 = vadd.f32 %v655_v18, %v567_v17  ;;  %v737_v31 = vmax.f32 %v694_v24, 0.0 }
 0x119   : > { %v722_v22 = vmax.f32 %v656_v20, 0.0 }
 0x11a   : > { %v606_v23 = vpop.f32.mrf.mxu2 }
 0x11b   : > { %v1191_v25 = vpack.c.bf16 %v722_v22, %v721_v21  ;;  %v607_v26 = vadd.f32 %v1678_v49, %v606_v23  ;;  %v695_v27 = vpop.f32.mrf.mxu3 }
 0x11c   : > { %v569_v28 = vpop.f32.mrf.mxu0 }
 0x11d   : > { %1251 = vst [vmem:[%s1685_s21 + $0x20] sm:$0xff] %v1191_v25   ;;  %v696_v29 = vadd.f32 %v695_v27, %v607_v26  ;;  %v658_v30 = vpop.f32.mrf.mxu1  ;;  %v570_v34 = vadd.f32 %v1678_v49, %v569_v28 }
 0x11f   : > { %v738_v32 = vmax.f32 %v696_v29, 0.0  ;;  %v659_v38 = vadd.f32 %v658_v30, %v570_v34 }
 0x121   : > { %v1231_v33 = vpack.c.bf16 %v738_v32, %v737_v31  ;;  %v723_v43 = vmax.f32 %v659_v38, 0.0 }
 0x122   : > { %v609_v35 = vpop.f32.mrf.mxu2 }
 0x123   : > { %1259 = vst [vmem:[%s1685_s21 + $0x60] sm:$0xff] %v1231_v33   ;;  %v698_v36 = vpop.f32.mrf.mxu3  ;;  %v610_v41 = vadd.f32 %v1678_v49, %v609_v35 }
 0x124   : > { %v571_v37 = vpop.f32.mrf.mxu0 }
 0x125   : > { %v572_v39 = vadd.f32 %v1678_v49, %v571_v37  ;;  %v660_v40 = vpop.f32.mrf.mxu1  ;;  %v699_v46 = vadd.f32 %v698_v36, %v610_v41 }
 0x127   : > { %v661_v42 = vadd.f32 %v660_v40, %v572_v39  ;;  %v739_v54 = vmax.f32 %v699_v46, 0.0 }
 0x129   : > { %v724_v44 = vmax.f32 %v661_v42, 0.0 }
 0x12a   : > { %v611_v45 = vpop.f32.mrf.mxu2 }
 0x12b   : > { %v1196_v47 = vpack.c.bf16 %v724_v44, %v723_v43  ;;  %v612_v48 = vadd.f32 %v1678_v49, %v611_v45  ;;  %v700_v50 = vpop.f32.mrf.mxu3 }
 0x12c   : > { %v574_v51 = vpop.f32.mrf.mxu0 }
 0x12d   : > { %1252 = vst [vmem:[%s1685_s21 + $0x28] sm:$0xff] %v1196_v47   ;;  %v701_v52 = vadd.f32 %v700_v50, %v612_v48  ;;  %v663_v53 = vpop.f32.mrf.mxu1  ;;  %v575_v57 = vadd.f32 %v1678_v49, %v574_v51 }
 0x12f   : > { %v740_v55 = vmax.f32 %v701_v52, 0.0  ;;  %v664_v61 = vadd.f32 %v663_v53, %v575_v57 }
 0x131   : > { %v1236_v56 = vpack.c.bf16 %v740_v55, %v739_v54  ;;  %v725_v2 = vmax.f32 %v664_v61, 0.0 }
 0x132   : > { %v614_v58 = vpop.f32.mrf.mxu2 }
 0x133   : > { %1260 = vst [vmem:[%s1685_s21 + $0x68] sm:$0xff] %v1236_v56   ;;  %v703_v59 = vpop.f32.mrf.mxu3  ;;  %v615_v0 = vadd.f32 %v1678_v49, %v614_v58 }
 0x134   : > { %v576_v60 = vpop.f32.mrf.mxu0 }
 0x135   : > { %v577_v62 = vadd.f32 %v1678_v49, %v576_v60  ;;  %v665_v63 = vpop.f32.mrf.mxu1  ;;  %v704_v5 = vadd.f32 %v703_v59, %v615_v0 }
 0x137   : > { %v666_v1 = vadd.f32 %v665_v63, %v577_v62  ;;  %v741_v12 = vmax.f32 %v704_v5, 0.0 }
 0x139   : > { %v726_v3 = vmax.f32 %v666_v1, 0.0 }
 0x13a   : > { %v616_v4 = vpop.f32.mrf.mxu2 }
 0x13b   : > { %v1201_v6 = vpack.c.bf16 %v726_v3, %v725_v2  ;;  %v617_v7 = vadd.f32 %v1678_v49, %v616_v4  ;;  %v705_v8 = vpop.f32.mrf.mxu3 }
 0x13c   : > { %v579_v9 = vpop.f32.mrf.mxu0 }
 0x13d   : > { %1253 = vst [vmem:[%s1685_s21 + $0x30] sm:$0xff] %v1201_v6   ;;  %v706_v10 = vadd.f32 %v705_v8, %v617_v7  ;;  %v668_v11 = vpop.f32.mrf.mxu1  ;;  %v580_v15 = vadd.f32 %v1678_v49, %v579_v9 }
 0x13f   : > { %v742_v13 = vmax.f32 %v706_v10, 0.0  ;;  %v669_v19 = vadd.f32 %v668_v11, %v580_v15 }
 0x141   : > { %v1241_v14 = vpack.c.bf16 %v742_v13, %v741_v12  ;;  %v727_v24 = vmax.f32 %v669_v19, 0.0 }
 0x142   : > { %v619_v16 = vpop.f32.mrf.mxu2 }
 0x143   : > { %1261 = vst [vmem:[%s1685_s21 + $0x70] sm:$0xff] %v1241_v14   ;;  %v708_v17 = vpop.f32.mrf.mxu3  ;;  %v620_v22 = vadd.f32 %v1678_v49, %v619_v16 }
 0x144   : > { %v581_v18 = vpop.f32.mrf.mxu0 }
 0x145   : > { %v582_v20 = vadd.f32 %v1678_v49, %v581_v18  ;;  %v670_v21 = vpop.f32.mrf.mxu1  ;;  %v709_v27 = vadd.f32 %v708_v17, %v620_v22 }
 0x147   : > { %v671_v23 = vadd.f32 %v670_v21, %v582_v20  ;;  %v743_v32 = vmax.f32 %v709_v27, 0.0 }
 0x149   : > { %v728_v25 = vmax.f32 %v671_v23, 0.0 }
 0x14a   : > { %v621_v26 = vpop.f32.mrf.mxu2 }
 0x14b   : > { %v1206_v28 = vpack.c.bf16 %v728_v25, %v727_v24  ;;  %v622_v29 = vadd.f32 %v1678_v49, %v621_v26  ;;  %v710_v30 = vpop.f32.mrf.mxu3 }
 0x14d   : > { %1254 = vst [vmem:[%s1685_s21 + $0x38] sm:$0xff] %v1206_v28   ;;  %v711_v31 = vadd.f32 %v710_v30, %v622_v29 }
 0x14f   : > { %v744_v33 = vmax.f32 %v711_v31, 0.0 }
 0x151   : > { %v1246_v34 = vpack.c.bf16 %v744_v33, %v743_v32 }
 0x153   : > { %1262 = vst [vmem:[%s1685_s21 + $0x78] sm:$0xff] %v1246_v34  }
 0x154   : > { %1430 = shalt.err (!%p1427_p10)
}
 0x155   : > { %s1480_s10 = smov 64   ;;  %s1481_s18 = smov 4  }
 0x156   : > { %1285 = dma.vmem_to_hbm [thread:$0]  (%p1569_p7), %s823_s29, 2048, %s825_s30, %s810_s16, %s1480_s10, %s1480_s10, %s1481_s18  }
 0x157 PF: > { %s839_s23 = sand.u32 1, %s1461_s12   ;;  %p1774_p12 = scmp.ge.s32.totalorder %s1473_s15, 2 }
 0x158   : > { %s840_s17 = scalar_lea.sflag [#allocation4], %s839_s23 }
 0x159   : > { %p1296_p13 = pnand %p1774_p12, %p1537_p6 }
 0x15b   : > { %p1297_p0 = pneg %p1296_p13 }
 0x15d   : > { %1456 = dma.done.wait (%p1297_p0), %s840_s17, 2048  }
 0x15e   : > { %1458 = vsyncadd (%p1297_p0), %s840_s17, 4294965248  ;;  %p17_p3 = scmp.ge.s32.totalorder %s1555_s26, 4   ;;  %s1775_s12 = smov %s1465_s13 }
 0x15f   : > { %s1776_s13 = smov %s1469_s14  ;;  %s1777_s14 = smov %s1565_s4 }
 0x160   : > { %s1778_s15 = smov %s1555_s26  ;;  %19 = sbr.rel (!%p17_p3) target bundleno = 6 (0x6), region = 81 }
 0x165   :  { %846 = vsyncpa [#allocation3], 1 }
 0x166   :  { %848 = vsyncpa [#allocation3 + $0x1], 1 }
 0x167   :  { %849 = vsyncpa [#allocation6], 1 }
 0x168   :  { %850 = vsyncpa [#allocation4], 1 }
 0x169   :  { %852 = vsyncpa [#allocation4 + $0x1], 1 }

</bundles_post_ra>
